<compile_context>
chip_gen: v7x
topology: tpu7x:2x2x1
jax: 0.10.0
libtpu: 0.0.40
codegen_flags: <defaults>
</compile_context>

<pallas_src>
import functools
import math

import jax
import jax.numpy as jnp
from jax import lax
from jax.experimental import pallas as pl
from jax.experimental.pallas import tpu as pltpu


# -----------------------------------------------------------------------------
# Kernel 1: fused Key+Value 3x3 same-padding convolution (KeyValue module)
# -----------------------------------------------------------------------------
def _kv_conv3x3_kernel(x_ref, w_ref, b_ref, o_ref, col_ref, *, H, W):
    """Fused Key+Value 3x3 conv (stride 1, padding 1) for one batch element.

    x_ref:   (1, Cin, H*W + 2*(W+1))  bf16  flattened, zero-padded activations
    w_ref:   (Cout, 9*Cin)            bf16  fused Key+Value weights, tap-major
    b_ref:   (Cout, 1)                f32   fused bias
    o_ref:   (1, Cout, H*W)           f32   lane-dense output block
    col_ref: (9*Cin, H*W)             f32   im2col scratch (VMEM)
    """
    HW = H * W
    Cin = x_ref.shape[1]

    xz = x_ref[0]                                             # (Cin, PADLEN)

    # Lane predicates for the column wrap of the flattened +-1 horizontal taps
    # (computed once, reused for 6 of the 9 taps).
    col_idx = lax.broadcasted_iota(jnp.int32, (Cin, HW), 1) % W
    not_first_col = col_idx != 0                              # valid for kx == 0
    not_last_col = col_idx != (W - 1)                         # valid for kx == 2

    # Build the im2col matrix: 9 statically-shifted taps of the flattened
    # activations.  Vertical (row) out-of-bounds reads land in the zero
    # padding; horizontal wrap-around is killed with a VPU select.
    for ky in range(3):
        for kx in range(3):
            t = ky * 3 + kx
            start = ky * W + kx                               # static offset
            patch = xz[:, start:start + HW].astype(jnp.float32)   # (Cin, HW)
            if kx == 0:
                patch = jnp.where(not_first_col, patch, 0.0)
            elif kx == 2:
                patch = jnp.where(not_last_col, patch, 0.0)
            col_ref[t * Cin:(t + 1) * Cin, :] = patch

    # Single MXU matmul, bf16 operands, f32 accumulation: (Cout,9Cin)@(9Cin,HW).
    acc = jnp.dot(w_ref[...], col_ref[...].astype(jnp.bfloat16),
                  preferred_element_type=jnp.float32)
    o_ref[0] = (acc + b_ref[...]).astype(o_ref.dtype)         # (Cout,1) broadcast


def conv3x3_keyvalue_fused(x_nchw, w_packed, b_packed, cout):
    """Fused Key+Value conv3x3 (stride=1, padding=1).  NCHW in, NCHW out."""
    N, Cin, H, W = x_nchw.shape
    HW = H * W
    PAD = W + 1
    PADLEN = HW + 2 * PAD

    # One fused wrapper pass over x: flatten spatial (free for row-major NCHW),
    # pad the flat axis by W+1 zeros each side (implements the conv's zero
    # padding for the vertical taps) and cast to bf16 (halves DMA bytes).
    x_prep = jnp.pad(x_nchw.reshape(N, Cin, HW),
                     ((0, 0), (0, 0), (PAD, PAD))).astype(jnp.bfloat16)

    kernel = functools.partial(_kv_conv3x3_kernel, H=H, W=W)

    out_flat = pl.pallas_call(
        kernel,
        out_shape=jax.ShapeDtypeStruct((N, cout, HW), x_nchw.dtype),
        grid_spec=pltpu.PrefetchScalarGridSpec(
            num_scalar_prefetch=0,
            grid=(N,),
            in_specs=[
                pl.BlockSpec((1, Cin, PADLEN), lambda n: (n, 0, 0)),
                pl.BlockSpec((cout, 9 * Cin), lambda n: (0, 0)),
                pl.BlockSpec((cout, 1), lambda n: (0, 0)),
            ],
            out_specs=pl.BlockSpec((1, cout, HW), lambda n: (n, 0, 0)),
            scratch_shapes=[pltpu.VMEM((9 * Cin, HW), jnp.float32)],
        ),
        compiler_params=pltpu.CompilerParams(
            dimension_semantics=("parallel",),
        ),
    )(x_prep, w_packed, b_packed)

    return out_flat.reshape(N, cout, H, W)


class KeyValuePallas:
    """JAX/Pallas equivalent of the PyTorch KeyValue module (fused Key+Value)."""

    def __init__(self, indim, keydim, valdim, key=None):
        if key is None:
            key = jax.random.PRNGKey(0)
        k1, k2, k3, k4 = jax.random.split(key, 4)
        # Deterministic init mimicking nn.Conv2d default (uniform +-1/sqrt(fan_in)).
        fan_in = indim * 3 * 3
        bound = 1.0 / (fan_in ** 0.5)
        self.key_w = jax.random.uniform(
            k1, (keydim, indim, 3, 3), jnp.float32, -bound, bound)
        self.key_b = jax.random.uniform(k2, (keydim,), jnp.float32, -bound, bound)
        self.val_w = jax.random.uniform(
            k3, (valdim, indim, 3, 3), jnp.float32, -bound, bound)
        self.val_b = jax.random.uniform(k4, (valdim,), jnp.float32, -bound, bound)

        self.indim, self.keydim, self.valdim = indim, keydim, valdim

        # Host-side weight packing: fuse Key+Value along Cout and pack the 3x3
        # taps into one (Cout, 9*Cin) bf16 matmul operand, tap-major /
        # channel-minor (matches the im2col row order built in the kernel).
        w_all = jnp.concatenate([self.key_w, self.val_w], axis=0)   # (Cout,Cin,3,3)
        self.w_packed = jnp.transpose(w_all, (0, 2, 3, 1)).reshape(
            keydim + valdim, 9 * indim).astype(jnp.bfloat16)
        self.b_packed = jnp.concatenate([self.key_b, self.val_b]).reshape(
            keydim + valdim, 1).astype(jnp.float32)

    def __call__(self, x_nchw):
        cout = self.keydim + self.valdim
        out = conv3x3_keyvalue_fused(x_nchw, self.w_packed, self.b_packed, cout)
        return out[:, :self.keydim], out[:, self.keydim:]


# -----------------------------------------------------------------------------
# Kernel 2: fused memory read (Memory module: bmm -> softmax -> bmm)
# -----------------------------------------------------------------------------
def _memory_read_kernel(k_ref, vt_ref, q_ref, o_ref, *, scale):
    """Fused memory read (torch Memory.forward) for one object.

    k_ref : (1, T, C)    bf16  memory keys  (m_in)
    vt_ref: (1, Vd, T)   bf16  memory values, pre-transposed (m_out^T)
    q_ref : (1, C, HW)   bf16  query keys, spatially flattened (q_in)
    o_ref : (1, Vd, HW)  f32   attention read-out (mem)
    """
    # Scores (T, HW) = keys @ queries, scaled by 1/sqrt(C); bf16 MXU / f32 acc.
    s = jnp.dot(k_ref[0], q_ref[0], preferred_element_type=jnp.float32) * scale
    # Softmax over memory entries (torch dim=1 == axis 0 here, sublane reduce).
    s_max = jnp.max(s, axis=0, keepdims=True)                 # (1, HW)
    e = jnp.exp(s - s_max)                                    # (T, HW) f32
    den = jnp.sum(e, axis=0, keepdims=True)                   # (1, HW)
    # Normalization commutes with the value matmul: mem = (V^T @ e) / den,
    # so only (Vd, HW) elements are scaled, with the EUP approx reciprocal.
    acc = jnp.dot(vt_ref[0], e.astype(jnp.bfloat16),
                  preferred_element_type=jnp.float32)         # (Vd, HW)
    o_ref[0] = (acc * pl.reciprocal(den, approx=True)).astype(o_ref.dtype)


def memory_read(m_in, m_out, q_in):
    """Attention read: softmax(m_in @ q_in / sqrt(C), over centers) applied to m_out."""
    no, T, C = m_in.shape
    _, _, Vd = m_out.shape
    _, Cq, H, W = q_in.shape
    assert Cq == C
    HW = H * W

    k_b = m_in.astype(jnp.bfloat16)                            # (no, T, C)
    vt_b = jnp.transpose(m_out, (0, 2, 1)).astype(jnp.bfloat16)  # (no, Vd, T)
    q_b = q_in.reshape(no, C, HW).astype(jnp.bfloat16)         # (no, C, HW)

    kernel = functools.partial(_memory_read_kernel, scale=1.0 / math.sqrt(C))

    mem = pl.pallas_call(
        kernel,
        out_shape=jax.ShapeDtypeStruct((no, Vd, HW), jnp.float32),
        grid_spec=pltpu.PrefetchScalarGridSpec(
            num_scalar_prefetch=0,
            grid=(no,),
            in_specs=[
                pl.BlockSpec((1, T, C), lambda n: (n, 0, 0)),
                pl.BlockSpec((1, Vd, T), lambda n: (n, 0, 0)),
                pl.BlockSpec((1, C, HW), lambda n: (n, 0, 0)),
            ],
            out_specs=pl.BlockSpec((1, Vd, HW), lambda n: (n, 0, 0)),
        ),
        compiler_params=pltpu.CompilerParams(
            dimension_semantics=("parallel",),
        ),
    )(k_b, vt_b, q_b)

    return mem.reshape(no, Vd, H, W)


class MemoryPallas:
    """JAX/Pallas equivalent of the PyTorch Memory module."""
    # TODO(synk): the attention map `p` returned by torch Memory is discarded in
    # STAN.segment, so it is not materialized here (saves a T*HW f32 writeback).

    def __call__(self, m_in, m_out, q_in, q_out):
        mem = memory_read(m_in, m_out, q_in)
        mem_out = jnp.concatenate([mem, q_out.astype(mem.dtype)], axis=1)
        return mem_out, None


# -----------------------------------------------------------------------------
# References + smoke test
# -----------------------------------------------------------------------------
def _reference_conv(x_nchw, w_oihw, b):
    out = lax.conv_general_dilated(
        x_nchw, w_oihw, window_strides=(1, 1), padding=((1, 1), (1, 1)),
        dimension_numbers=("NCHW", "OIHW", "NCHW"),
        precision=lax.Precision.HIGHEST)
    return out + b[None, :, None, None]


def _reference_memory(m_in, m_out, q_in):
    no, T, C = m_in.shape
    _, _, Vd = m_out.shape
    _, _, H, W = q_in.shape
    k = m_in.astype(jnp.bfloat16).astype(jnp.float32)
    v = m_out.astype(jnp.bfloat16).astype(jnp.float32)
    q = q_in.reshape(no, C, H * W).astype(jnp.bfloat16).astype(jnp.float32)
    s = jnp.einsum("ntc,nch->nth", k, q, precision=lax.Precision.HIGHEST)
    s = s / math.sqrt(C)
    p = jax.nn.softmax(s, axis=1)
    mem = jnp.einsum("ntv,nth->nvh", v, p, precision=lax.Precision.HIGHEST)
    return mem.reshape(no, Vd, H, W)


if __name__ == "__main__":
    # Small shapes consistent with STAN's r4-level path:
    # num_objects=2, indim=4, keydim=8, valdim=16, H=W=16, T=64 memory entries.
    indim, keydim, valdim = 4, 8, 16
    N, H, W = 2, 16, 16
    T = 64

    root = jax.random.PRNGKey(0)
    kx, kk, kv = jax.random.split(root, 3)
    x = jax.random.normal(kx, (N, indim, H, W), dtype=jnp.float32)
    mem_keys = jax.random.normal(kk, (N, T, keydim), dtype=jnp.float32)
    mem_vals = jax.random.normal(kv, (N, T, valdim), dtype=jnp.float32)

    kv_head = KeyValuePallas(indim, keydim, valdim, key=jax.random.PRNGKey(0))
    memory = MemoryPallas()

    # KV head on the query feature map, then a Memory read against the memory
    # bank (mirrors the KV_Q_r4 -> Memory / SpatialMemory path of STAN.segment).
    k4, v4 = kv_head(x)
    mem_out, _ = memory(mem_keys, mem_vals, k4, v4)
    jax.block_until_ready((k4, v4, mem_out))

    # References: XLA conv / softmax-attention on bf16-rounded operands (the
    # kernels feed the MXU bf16 operands and accumulate in f32).
    x_r = x.astype(jnp.bfloat16).astype(jnp.float32)
    kw_r = kv_head.key_w.astype(jnp.bfloat16).astype(jnp.float32)
    vw_r = kv_head.val_w.astype(jnp.bfloat16).astype(jnp.float32)
    k_ref = _reference_conv(x_r, kw_r, kv_head.key_b)
    v_ref = _reference_conv(x_r, vw_r, kv_head.val_b)
    mem_ref = _reference_memory(mem_keys, mem_vals, k4)
    memout_ref = jnp.concatenate([mem_ref, v4], axis=1)

    assert k4.shape == (N, keydim, H, W)
    assert v4.shape == (N, valdim, H, W)
    assert mem_out.shape == (N, 2 * valdim, H, W)
    assert jnp.allclose(k4, k_ref, atol=2e-3, rtol=2e-3), \
        float(jnp.max(jnp.abs(k4 - k_ref)))
    assert jnp.allclose(v4, v_ref, atol=2e-3, rtol=2e-3), \
        float(jnp.max(jnp.abs(v4 - v_ref)))
    assert jnp.allclose(mem_out, memout_ref, atol=5e-3, rtol=5e-3), \
        float(jnp.max(jnp.abs(mem_out - memout_ref)))

    print("KERNEL_OK")
</pallas_src>

<mosaic_0001>
module attributes {stable_mosaic.version = 11 : i64} {
  func.func @_kv_conv3x3_kernel(%arg0: i32, %arg1: memref<1x4x290xbf16, #tpu.memory_space<vmem>>, %arg2: memref<24x36xbf16, #tpu.memory_space<vmem>>, %arg3: memref<24x1xf32, #tpu.memory_space<vmem>>, %arg4: memref<1x24x256xf32, #tpu.memory_space<vmem>>, %arg5: memref<36x256xf32, #tpu.memory_space<vmem>>) attributes {dimension_semantics = [#tpu.dimension_semantics<parallel>], iteration_bounds = array<i64: 2>, scalar_prefetch = 0 : i64, scratch_operands = 1 : i64, tpu.core_type = #tpu.core_type<tc>, window_params = [{transform_indices = @transform_0, window_bounds = array<i64: 1, 4, 290>}, {pipeline_mode = #tpu.pipeline_mode<synchronous>, transform_indices = @transform_1, window_bounds = array<i64: 24, 36>}, {pipeline_mode = #tpu.pipeline_mode<synchronous>, transform_indices = @transform_2, window_bounds = array<i64: 24, 1>}, {transform_indices = @transform_3, window_bounds = array<i64: 1, 24, 256>}]} {
    %c0 = arith.constant 0 : index
    %c0_0 = arith.constant 0 : index
    %c0_1 = arith.constant 0 : index
    %0 = vector.load %arg1[%c0, %c0_0, %c0_1] : memref<1x4x290xbf16, #tpu.memory_space<vmem>>, vector<1x4x290xbf16>
    %1 = vector.shape_cast %0 : vector<1x4x290xbf16> to vector<4x290xbf16>
    %2 = tpu.iota {dimensions = array<i32: 1>} : vector<4x256xi32>
    %c16_i32 = arith.constant 16 : i32
    %c0_i32 = arith.constant 0 : i32
    %3 = arith.cmpi eq, %c16_i32, %c0_i32 : i32
    %c1_i32 = arith.constant 1 : i32
    %4 = arith.select %3, %c1_i32, %c16_i32 : i32
    %5 = vector.broadcast %4 : i32 to vector<4x256xi32>
    %6 = arith.remsi %2, %5 : vector<4x256xi32>
    %c0_i32_2 = arith.constant 0 : i32
    %7 = vector.broadcast %c0_i32_2 : i32 to vector<4x256xi32>
    %8 = arith.cmpi ne, %6, %7 : vector<4x256xi32>
    %c0_i32_3 = arith.constant 0 : i32
    %9 = vector.broadcast %c0_i32_3 : i32 to vector<4x256xi32>
    %10 = arith.cmpi slt, %6, %9 : vector<4x256xi32>
    %c0_i32_4 = arith.constant 0 : i32
    %11 = arith.cmpi slt, %4, %c0_i32_4 : i32
    %12 = vector.broadcast %11 : i1 to vector<4x256xi1>
    %13 = vector.broadcast %12 : vector<4x256xi1> to vector<4x256xi1>
    %14 = arith.xori %10, %13 : vector<4x256xi1>
    %15 = arith.andi %14, %8 : vector<4x256xi1>
    %16 = vector.broadcast %4 : i32 to vector<4x256xi32>
    %17 = arith.addi %6, %16 : vector<4x256xi32>
    %18 = arith.select %15, %17, %6 : vector<4x256xi1>, vector<4x256xi32>
    %c0_i32_5 = arith.constant 0 : i32
    %19 = vector.broadcast %c0_i32_5 : i32 to vector<4x256xi32>
    %20 = arith.cmpi ne, %18, %19 : vector<4x256xi32>
    %c15_i32 = arith.constant 15 : i32
    %21 = vector.broadcast %c15_i32 : i32 to vector<4x256xi32>
    %22 = arith.cmpi ne, %18, %21 : vector<4x256xi32>
    %23 = vector.extract_strided_slice %1 {offsets = [0, 0], sizes = [4, 256], strides = [1, 1]} : vector<4x290xbf16> to vector<4x256xbf16>
    %24 = arith.extf %23 : vector<4x256xbf16> to vector<4x256xf32>
    %cst = arith.constant 0.000000e+00 : f32
    %25 = vector.broadcast %cst : f32 to vector<4x256xf32>
    %26 = arith.select %20, %24, %25 : vector<4x256xi1>, vector<4x256xf32>
    %c0_6 = arith.constant 0 : index
    %c0_7 = arith.constant 0 : index
    %27 = vector.load %arg5[%c0_6, %c0_7] : memref<36x256xf32, #tpu.memory_space<vmem>>, vector<4x256xf32>
    tpu.vector_store %arg5[%c0_6, %c0_7], %26 {strides = array<i32>} : memref<36x256xf32, #tpu.memory_space<vmem>>, vector<4x256xf32>,
    %28 = vector.extract_strided_slice %1 {offsets = [0, 1], sizes = [4, 256], strides = [1, 1]} : vector<4x290xbf16> to vector<4x256xbf16>
    %29 = arith.extf %28 : vector<4x256xbf16> to vector<4x256xf32>
    %c4 = arith.constant 4 : index
    %c0_8 = arith.constant 0 : index
    %30 = vector.load %arg5[%c4, %c0_8] : memref<36x256xf32, #tpu.memory_space<vmem>>, vector<4x256xf32>
    tpu.vector_store %arg5[%c4, %c0_8], %29 {strides = array<i32>} : memref<36x256xf32, #tpu.memory_space<vmem>>, vector<4x256xf32>,
    %31 = vector.extract_strided_slice %1 {offsets = [0, 2], sizes = [4, 256], strides = [1, 1]} : vector<4x290xbf16> to vector<4x256xbf16>
    %32 = arith.extf %31 : vector<4x256xbf16> to vector<4x256xf32>
    %cst_9 = arith.constant 0.000000e+00 : f32
    %33 = vector.broadcast %cst_9 : f32 to vector<4x256xf32>
    %34 = arith.select %22, %32, %33 : vector<4x256xi1>, vector<4x256xf32>
    %c8 = arith.constant 8 : index
    %c0_10 = arith.constant 0 : index
    %35 = vector.load %arg5[%c8, %c0_10] : memref<36x256xf32, #tpu.memory_space<vmem>>, vector<4x256xf32>
    tpu.vector_store %arg5[%c8, %c0_10], %34 {strides = array<i32>} : memref<36x256xf32, #tpu.memory_space<vmem>>, vector<4x256xf32>,
    %36 = vector.extract_strided_slice %1 {offsets = [0, 16], sizes = [4, 256], strides = [1, 1]} : vector<4x290xbf16> to vector<4x256xbf16>
    %37 = arith.extf %36 : vector<4x256xbf16> to vector<4x256xf32>
    %cst_11 = arith.constant 0.000000e+00 : f32
    %38 = vector.broadcast %cst_11 : f32 to vector<4x256xf32>
    %39 = arith.select %20, %37, %38 : vector<4x256xi1>, vector<4x256xf32>
    %c12 = arith.constant 12 : index
    %c0_12 = arith.constant 0 : index
    %40 = vector.load %arg5[%c12, %c0_12] : memref<36x256xf32, #tpu.memory_space<vmem>>, vector<4x256xf32>
    tpu.vector_store %arg5[%c12, %c0_12], %39 {strides = array<i32>} : memref<36x256xf32, #tpu.memory_space<vmem>>, vector<4x256xf32>,
    %41 = vector.extract_strided_slice %1 {offsets = [0, 17], sizes = [4, 256], strides = [1, 1]} : vector<4x290xbf16> to vector<4x256xbf16>
    %42 = arith.extf %41 : vector<4x256xbf16> to vector<4x256xf32>
    %c16 = arith.constant 16 : index
    %c0_13 = arith.constant 0 : index
    %43 = vector.load %arg5[%c16, %c0_13] : memref<36x256xf32, #tpu.memory_space<vmem>>, vector<4x256xf32>
    tpu.vector_store %arg5[%c16, %c0_13], %42 {strides = array<i32>} : memref<36x256xf32, #tpu.memory_space<vmem>>, vector<4x256xf32>,
    %44 = vector.extract_strided_slice %1 {offsets = [0, 18], sizes = [4, 256], strides = [1, 1]} : vector<4x290xbf16> to vector<4x256xbf16>
    %45 = arith.extf %44 : vector<4x256xbf16> to vector<4x256xf32>
    %cst_14 = arith.constant 0.000000e+00 : f32
    %46 = vector.broadcast %cst_14 : f32 to vector<4x256xf32>
    %47 = arith.select %22, %45, %46 : vector<4x256xi1>, vector<4x256xf32>
    %c20 = arith.constant 20 : index
    %c0_15 = arith.constant 0 : index
    %48 = vector.load %arg5[%c20, %c0_15] : memref<36x256xf32, #tpu.memory_space<vmem>>, vector<4x256xf32>
    tpu.vector_store %arg5[%c20, %c0_15], %47 {strides = array<i32>} : memref<36x256xf32, #tpu.memory_space<vmem>>, vector<4x256xf32>,
    %49 = vector.extract_strided_slice %1 {offsets = [0, 32], sizes = [4, 256], strides = [1, 1]} : vector<4x290xbf16> to vector<4x256xbf16>
    %50 = arith.extf %49 : vector<4x256xbf16> to vector<4x256xf32>
    %cst_16 = arith.constant 0.000000e+00 : f32
    %51 = vector.broadcast %cst_16 : f32 to vector<4x256xf32>
    %52 = arith.select %20, %50, %51 : vector<4x256xi1>, vector<4x256xf32>
    %c24 = arith.constant 24 : index
    %c0_17 = arith.constant 0 : index
    %53 = vector.load %arg5[%c24, %c0_17] : memref<36x256xf32, #tpu.memory_space<vmem>>, vector<4x256xf32>
    tpu.vector_store %arg5[%c24, %c0_17], %52 {strides = array<i32>} : memref<36x256xf32, #tpu.memory_space<vmem>>, vector<4x256xf32>,
    %54 = vector.extract_strided_slice %1 {offsets = [0, 33], sizes = [4, 256], strides = [1, 1]} : vector<4x290xbf16> to vector<4x256xbf16>
    %55 = arith.extf %54 : vector<4x256xbf16> to vector<4x256xf32>
    %c28 = arith.constant 28 : index
    %c0_18 = arith.constant 0 : index
    %56 = vector.load %arg5[%c28, %c0_18] : memref<36x256xf32, #tpu.memory_space<vmem>>, vector<4x256xf32>
    tpu.vector_store %arg5[%c28, %c0_18], %55 {strides = array<i32>} : memref<36x256xf32, #tpu.memory_space<vmem>>, vector<4x256xf32>,
    %57 = vector.extract_strided_slice %1 {offsets = [0, 34], sizes = [4, 256], strides = [1, 1]} : vector<4x290xbf16> to vector<4x256xbf16>
    %58 = arith.extf %57 : vector<4x256xbf16> to vector<4x256xf32>
    %cst_19 = arith.constant 0.000000e+00 : f32
    %59 = vector.broadcast %cst_19 : f32 to vector<4x256xf32>
    %60 = arith.select %22, %58, %59 : vector<4x256xi1>, vector<4x256xf32>
    %c32 = arith.constant 32 : index
    %c0_20 = arith.constant 0 : index
    %61 = vector.load %arg5[%c32, %c0_20] : memref<36x256xf32, #tpu.memory_space<vmem>>, vector<4x256xf32>
    tpu.vector_store %arg5[%c32, %c0_20], %60 {strides = array<i32>} : memref<36x256xf32, #tpu.memory_space<vmem>>, vector<4x256xf32>,
    %c0_21 = arith.constant 0 : index
    %c0_22 = arith.constant 0 : index
    %62 = vector.load %arg2[%c0_21, %c0_22] : memref<24x36xbf16, #tpu.memory_space<vmem>>, vector<24x36xbf16>
    %c0_23 = arith.constant 0 : index
    %c0_24 = arith.constant 0 : index
    %63 = vector.load %arg5[%c0_23, %c0_24] : memref<36x256xf32, #tpu.memory_space<vmem>>, vector<36x256xf32>
    %64 = arith.truncf %63 : vector<36x256xf32> to vector<36x256xbf16>
    %cst_25 = arith.constant dense<0.000000e+00> : vector<24x256xf32>
    %65 = tpu.matmul %62, %64, %cst_25 {dimension_numbers = #tpu.dot_dimension_numbers<[1], [0], [0], [1], [0, 0, 1, 1], [], []>} : vector<24x36xbf16>, vector<36x256xbf16>, vector<24x256xf32> -> vector<24x256xf32>
    %c0_26 = arith.constant 0 : index
    %c0_27 = arith.constant 0 : index
    %66 = vector.load %arg3[%c0_26, %c0_27] : memref<24x1xf32, #tpu.memory_space<vmem>>, vector<24x1xf32>
    %67 = vector.broadcast %66 : vector<24x1xf32> to vector<24x256xf32>
    %68 = arith.addf %65, %67 : vector<24x256xf32>
    %c0_28 = arith.constant 0 : index
    %c0_29 = arith.constant 0 : index
    %c0_30 = arith.constant 0 : index
    %69 = vector.load %arg4[%c0_28, %c0_29, %c0_30] : memref<1x24x256xf32, #tpu.memory_space<vmem>>, vector<1x24x256xf32>
    %70 = vector.shape_cast %69 : vector<1x24x256xf32> to vector<24x256xf32>
    %71 = vector.shape_cast %68 : vector<24x256xf32> to vector<1x24x256xf32>
    tpu.vector_store %arg4[%c0_28, %c0_29, %c0_30], %71 {strides = array<i32>} : memref<1x24x256xf32, #tpu.memory_space<vmem>>, vector<1x24x256xf32>,
    return
  }
  func.func @transform_0(%arg0: i32) -> (i32, i32, i32) {
    %c0_i32 = arith.constant 0 : i32
    %c0_i32_0 = arith.constant 0 : i32
    %c0_i32_1 = arith.constant 0 : i32
    return %arg0, %c0_i32, %c0_i32_0 : i32, i32, i32
  }
  func.func @transform_1(%arg0: i32) -> (i32, i32) {
    %c0_i32 = arith.constant 0 : i32
    %c0_i32_0 = arith.constant 0 : i32
    %c0_i32_1 = arith.constant 0 : i32
    return %c0_i32, %c0_i32_0 : i32, i32
  }
  func.func @transform_2(%arg0: i32) -> (i32, i32) {
    %c0_i32 = arith.constant 0 : i32
    %c0_i32_0 = arith.constant 0 : i32
    %c0_i32_1 = arith.constant 0 : i32
    return %c0_i32, %c0_i32_0 : i32, i32
  }
  func.func @transform_3(%arg0: i32) -> (i32, i32, i32) {
    %c0_i32 = arith.constant 0 : i32
    %c0_i32_0 = arith.constant 0 : i32
    %c0_i32_1 = arith.constant 0 : i32
    return %arg0, %c0_i32, %c0_i32_0 : i32, i32, i32
  }
}

</mosaic_0001>

<bundles_post_ra>
// kernel: tpu_custom_call.1
= control target key start
LH: loop header
LB: loop body
LE: loop exit
PB: predicated region body
PF: predicated region fallthrough
CT: control target
= control target key end

     0   :  { %8 = vsyncpa [#allocation4], 0  ;;  %s914_s0 = inlined_call_operand.vmem [shape: bf16[2,4,290], index: 0, kind: input, shape index: {}]   ;;  %s915_s1 = inlined_call_operand.vmem [shape: bf16[24,36], index: 1, kind: input, shape index: {}]   ;;  %s916_s2 = inlined_call_operand.vmem [shape: f32[24,1], index: 2, kind: input, shape index: {}]   ;;  %s917_s3 = inlined_call_operand.hbm [shape: f32[2,24,256], index: 3, kind: output, shape index: {}]  }
   0x1   :  { %10 = vsyncpa [#allocation4 + $0x1], 0  ;;  %s744_s12 = smov 0   ;;  %s746_s13 = smov 0  }
   0x2   :  { %s748_s14 = smov 0   ;;  %s750_s15 = smov 0  }
   0x3 LB: > { %s765_s16 = sadd.s32 4294967295, %s710_s15   ;;  %s532_s17 = sadd.s32 4294967294, %s710_s15   ;;  %s710_s15 = sphi %s750_s15, %s931_s15   ;;  %s706_s14 = sphi %s748_s14, %s930_s14   ;;  %s702_s13 = sphi %s746_s13, %s929_s13   ;;  %s698_s12 = sphi %s744_s12, %s928_s12  }
   0x4   : > { %s769_s18 = sadd.s32 1, %s710_s15   ;;  %s91_s19 = sadd.s32 1, %s706_s14 }
   0x5   : > { %s88_s20 = ssub.s32 %s710_s15, %s769_s18  ;;  %p101_p0 = scmp.ne.s32.totalorder %s706_s14, %s702_s13 }
   0x6   : > { %p89_p1 = scmp.eq.s32.totalorder %s88_s20, 0  ;;  %p102_p2 = scmp.eq.s32.totalorder %s765_s16, 1 }
   0x7   : > { %p107_p3 = scmp.ne.s32.totalorder %s702_s13, %s698_s12  ;;  %p108_p4 = scmp.eq.s32.totalorder %s532_s17, 1 }
   0x8   : > { %s780_s21 = scalar_select %p89_p1, %s706_s14, %s91_s19  }
   0x9   : > { %p782_p5 = por %p102_p2, %p101_p0  ;;  %p786_p6 = por %p108_p4, %p107_p3 }
   0xa   : > { %p535_p7 = scmp.ge.s32.totalorder %s710_s15, 1  ;;  %p140_p8 = scmp.lt.s32.totalorder %s710_s15, 3 }
   0xc   : > { %p141_p9 = pnand %p535_p7, %p140_p8 }
   0xd   : > { %p164_p10 = scmp.lt.s32.totalorder (!%p141_p9), %s765_s16, 1  ;;  %v171_v0 = vlaneseq (!%p141_p9)  ;;  %s712_s29 = smov (!%p141_p9), 110   ;;  %v720_v18 = vmov (!%p141_p9), 0   ;;  %v360_v19 = vld [vmem:[%s916_s2 + $0x8] sm:$0xff] (!%p141_p9)  ;;  %v359_v20 = vld [vmem:[%s916_s2] sm:$0xff] (!%p141_p9)  ;;  %v361_v21 = vld [vmem:[%s916_s2 + $0x10] sm:$0xff] (!%p141_p9) }
   0xe   : > { %144 = sbr.rel (%p141_p9) target bundleno = 422 (0x1a6), region = 32  ;;  %s713_s30 = smov (!%p141_p9), 112   ;;  %431 = vmatprep.mubr.bf16.mxu0 (!%p141_p9), %v720_v18  ;;  %441 = vmatprep.mubr.bf16.mxu1 (!%p141_p9), %v720_v18  ;;  %vm233_vm2 = vcmask (!%p141_p9), 1031168   ;;  %vm248_vm5 = vcmask (!%p141_p9), 916480   ;;  %vm220_vm6 = vcmask (!%p141_p9), 1039360   ;;  %vm282_vm7 = vcmask (!%p141_p9), 900096  }
   0xf   : > { %v794_v1 = vand.u32 (!%p141_p9), 127, %v171_v0  ;;  %s714_s4 = smov (!%p141_p9), 126   ;;  %s715_s5 = smov (!%p141_p9), 127   ;;  %645 = vset.pattern.permute.xlu1 (!%p141_p9), %v720_v18  ;;  %644 = vset.pattern.permute.xlu0 (!%p141_p9), %v720_v18  ;;  %vm303_vm8 = vcmask (!%p141_p9), 785408   ;;  %vm269_vm9 = vcmask (!%p141_p9), 908288   ;;  %vm318_vm10 = vcmask (!%p141_p9), 777216  }
  0x10   : > { %s716_s6 = smov (!%p141_p9), 111   ;;  %s717_s7 = smov (!%p141_p9), 96   ;;  %vm331_vm11 = vcmask (!%p141_p9), 769024   ;;  %vm392_vm12 = vcmask (!%p141_p9), 1041408   ;;  %vm385_vm13 = vcmask (!%p141_p9), 293888  }
  0x11   : > { %v173_v2 = vadd.s32 (!%p141_p9), 128, %v794_v1  ;;  %v178_v4 = vand.u32 (!%p141_p9), 15, %v794_v1  ;;  %s718_s8 = smov (!%p141_p9), 95   ;;  %s719_s9 = smov (!%p141_p9), 94  }
  0x12   : > { %s721_s11 = smov (!%p141_p9), [#allocation3]  }
  0x13   : > { %v185_v7 = vand.u32 (!%p141_p9), 15, %v173_v2  ;;  %vm801_vm0 = vcmp.ne.s32.totalorder (!%p141_p9), %v178_v4, 0  ;;  %vm826_vm4 = vcmp.ne.s32.totalorder (!%p141_p9), %v178_v4, 15  ;;  %s652_s17 = sshll.u32 (!%p141_p9), %s721_s11, 4  ;;  %s653_s17 = int_to_ptr.vmem [resolvable:$false] %s652_s17 }
  0x14   : > { %s654_s19 = scalar_lea.vmem (!%p141_p9), %s653_s17, 1536 }
  0x15   : > { %s165_s24 = scalar_select %p164_p10, %s765_s16, 1  ;;  %vm805_vm1 = vcmp.ne.s32.totalorder %v185_v7, 0  ;;  %vm822_vm3 = vcmp.ne.s32.totalorder %v185_v7, 15 }
  0x17   : > { %s552_s25 = smul.u32 6, %s165_s24 }
  0x19   : > { %s168_s28 = scalar_lea.vmem %s914_s0, %s552_s25 }
  0x1a   : > { %v170_v3 = vld [vmem:[%s168_s28] sm:$0x3f] }
  0x1b   : > { %v202_v5 = vunpack.c.l.bf16 %v170_v3  ;;  %v210_v6 = vunpack.c.h.bf16 %v170_v3 }
  0x1d   : > { %276 = vrot.lane.b32.xlu1 %v202_v5, %s712_s29  ;;  %242 = vrot.lane.b32.xlu0 %v202_v5, %s713_s30  ;;  %v204_v9 = vcombine.high %v202_v5, %v202_v5  ;;  %v213_v10 = vcombine.low %v210_v6, %v210_v6  ;;  %v206_v12 = vsel %vm801_vm0, %v202_v5, 0.0  ;;  %v212_v16 = vcombine.low %v202_v5, %v202_v5 }
  0x1e   : > { %208 = vst [vmem:[#allocation2] sm:$0xf] %v206_v12 }
  0x1f   : > { %v609_v13 = vpack.i.bf16 %v210_v6, %v204_v9  ;;  %v614_v14 = vpack.i.bf16 %v213_v10, %v202_v5  ;;  %v207_v15 = vsel %vm805_vm1, %v204_v9, 0.0  ;;  %v639_v17 = vpack.i.bf16 %v204_v9, %v202_v5 }
  0x20   : > { %209 = vst [vmem:[#allocation2 + $0x8] sm:$0xf] %v207_v15 }
  0x21   : > { %227 = vrot.lane.b32.xlu0 %v202_v5, %s714_s4  ;;  %610 = vrot.lane.b32.xlu1 %v609_v13, %s714_s4 }
  0x25   : > { %615 = vrot.lane.b32.xlu1 %v614_v14, %s715_s5  ;;  %605 = vrot.lane.b32.xlu0 %v609_v13, %s713_s30 }
  0x29   : > { %214 = vrot.lane.b32.xlu1 %v212_v16, %s715_s5  ;;  %620 = vrot.lane.b32.xlu0 %v609_v13, %s712_s29  ;;  %s161_s29 = sand.u32 1, %s702_s13  }
  0x2a   : > { %s551_s30 = smul.u32 48, %s161_s29 }
  0x2c   : > { %s163_s4 = scalar_lea.vmem [#allocation3], %s551_s30 }
  0x2d   : > { %630 = vrot.lane.b32.xlu1 %v609_v13, %s716_s6  ;;  %625 = vrot.lane.b32.xlu0 %v609_v13, %s717_s7  ;;  %s470_s5 = sshll.u32 %s163_s4, 4  ;;  %s866_s5 = int_to_ptr.vmem [resolvable:$true] %s470_s5 }
  0x2e   : > { %s648_s10 = scalar_lea.vmem %s866_s5, 768  ;;  %p655_p0 = scmp.lt.s32.totalorder %s866_s5, %s653_s17 }
  0x2f   : > { %p649_p11 = scmp.ne.s32.totalorder %s866_s5, %s648_s10  ;;  %p656_p1 = scmp.lt.s32.totalorder %s654_s19, %s648_s10 }
  0x31   : > { %635 = vrot.lane.b32.xlu1 %v614_v14, %s718_s8  ;;  %297 = vrot.lane.b32.xlu0 %v202_v5, %s717_s7  ;;  %p650_p12 = pnand %p649_p11, %p782_p5  ;;  %p657_p2 = por %p656_p1, %p655_p0 }
  0x33   : > { %p651_p13 = pneg %p650_p12 }
  0x35   : > { %312 = vrot.lane.b32.xlu1 %v212_v16, %s718_s8  ;;  %263 = vrot.lane.b32.xlu0 %v202_v5, %s716_s6  ;;  %s553_s6 = smul.u32 768, %s765_s16  ;;  %p658_p3 = pnand %p657_p2, %p651_p13 }
  0x37   : > { %s871_s8 = scalar_lea.hbm %s917_s3, %s553_s6 }
  0x39   : > { %640 = vrot.lane.b32.xlu0 %v639_v17, %s719_s9  ;;  %329 = vrot.lane.b32.xlu1 %v210_v6, %s719_s9  ;;  %s873_s9 = scalar_lea.sflag [#allocation4], %s161_s29 }
  0x3d   : > { %369 = vperm.xlu1 %645, %v360_v19   ;;  %364 = vperm.xlu0 %644, %v359_v20  }
  0x41   : > { %374 = vperm.xlu1 %645, %v361_v21  }
  0x8f   : > { %v277_v22 = vpop.permute.xlu1 %276  ;;  %v243_v23 = vpop.permute.xlu0 %242 }
  0x93   : > { %v228_v24 = vpop.permute.xlu0 %227  ;;  %v611_v25 = vpop.permute.xlu1 %610 }
  0x94   : > { %v613_v27 = vunpack.i.h.bf16 %v611_v25  ;;  %v612_v28 = vunpack.i.l.bf16 %v611_v25 }
  0x96   : > { %v234_v30 = vsel %vm233_vm2, %v228_v24, %v612_v28  ;;  %v235_v31 = vsel %vm233_vm2, %v612_v28, %v613_v27 }
  0x97   : > { %v239_v32 = vsel %vm822_vm3, %v235_v31, 0.0  ;;  %v616_v33 = vpop.permute.xlu1 %615  ;;  %v606_v34 = vpop.permute.xlu0 %605  ;;  %v238_v35 = vsel %vm826_vm4, %v234_v30, 0.0 }
  0x98   : > { %241 = vst [vmem:[#allocation2 + $0x18] sm:$0xf] %v239_v32  ;;  %v618_v36 = vunpack.i.h.bf16 %v616_v33  ;;  %v617_v37 = vunpack.i.l.bf16 %v616_v33  ;;  %v608_v38 = vunpack.i.h.bf16 %v606_v34  ;;  %v607_v39 = vunpack.i.l.bf16 %v606_v34  ;;  %240 = vst [vmem:[#allocation2 + $0x10] sm:$0xf] %v238_v35 }
  0x9a   : > { %v249_v40 = vsel %vm248_vm5, %v243_v23, %v607_v39  ;;  %v250_v41 = vsel %vm248_vm5, %v607_v39, %v608_v38  ;;  %v222_v42 = vsel %vm220_vm6, %v617_v37, %v618_v36  ;;  %v646_v39 = vld [vmem:[%s915_s1] sm:$0xff]  }
  0x9b   : > { %v254_v43 = vsel %vm805_vm1, %v250_v41, 0.0  ;;  %v215_v44 = vpop.permute.xlu1 %214  ;;  %226 = vst [vmem:[#allocation2 + $0x8] sm:$0xf0] %v222_v42  ;;  %v621_v45 = vpop.permute.xlu0 %620  ;;  %v253_v46 = vsel %vm801_vm0, %v249_v40, 0.0  ;;  %v647_v40 = vld [vmem:[%s915_s1 + $0x8] ss:$0 sps:$4 sm:$0xff]  }
  0x9c   : > { %v258_v47 = vrot.slane %v254_v43, 4  ;;  %v221_v48 = vsel %vm220_vm6, %v215_v44, %v617_v37  ;;  %v623_v49 = vunpack.i.h.bf16 %v621_v45  ;;  %v622_v50 = vunpack.i.l.bf16 %v621_v45 }
  0x9d   : > { %225 = vst [vmem:[#allocation2] sm:$0xf0] %v221_v48  ;;  %v257_v51 = vrot.slane %v253_v46, 4 }
  0x9e   : > { %262 = vst [vmem:[#allocation2 + $0x18] sm:$0xf0] %v258_v47  ;;  %v283_v52 = vsel %vm282_vm7, %v277_v22, %v622_v50  ;;  %v284_v53 = vsel %vm282_vm7, %v622_v50, %v623_v49 }
  0x9f   : > { %v288_v54 = vsel %vm822_vm3, %v284_v53, 0.0  ;;  %v631_v55 = vpop.permute.xlu1 %630  ;;  %v626_v56 = vpop.permute.xlu0 %625  ;;  %261 = vst [vmem:[#allocation2 + $0x10] sm:$0xf0] %v257_v51  ;;  %v287_v57 = vsel %vm826_vm4, %v283_v52, 0.0 }
  0xa0   : > { %v292_v58 = vrot.slane %v288_v54, 4  ;;  %v633_v59 = vunpack.i.h.bf16 %v631_v55  ;;  %v632_v60 = vunpack.i.l.bf16 %v631_v55  ;;  %v628_v61 = vunpack.i.h.bf16 %v626_v56 }
  0xa1   : > { %v627_v62 = vunpack.i.l.bf16 %v626_v56  ;;  %v291_v63 = vrot.slane %v287_v57, 4 }
  0xa2   : > { %296 = vst [vmem:[#allocation2 + $0x28] sm:$0xf0] %v292_v58  ;;  %v271_v0 = vsel %vm269_vm9, %v632_v60, %v633_v59  ;;  %v344_v4 = vld [vmem:[#allocation2 + $0x8] sm:$0xff] }
  0xa3   : > { %v636_v1 = vpop.permute.xlu1 %635  ;;  %v298_v2 = vpop.permute.xlu0 %297  ;;  %295 = vst [vmem:[#allocation2 + $0x20] sm:$0xf0] %v291_v63  ;;  %v305_v3 = vsel %vm303_vm8, %v627_v62, %v628_v61  ;;  %275 = vst [vmem:[#allocation2 + $0x28] sm:$0xf] %v271_v0 }
  0xa4   : > { %v638_v5 = vunpack.i.h.bf16 %v636_v1  ;;  %v637_v6 = vunpack.i.l.bf16 %v636_v1  ;;  %v304_v7 = vsel %vm303_vm8, %v298_v2, %v627_v62  ;;  %v309_v9 = vsel %vm805_vm1, %v305_v3, 0.0  ;;  %v343_v10 = vld [vmem:[#allocation2] sm:$0xff] }
  0xa5   : > { %v308_v12 = vsel %vm801_vm0, %v304_v7, 0.0  ;;  %311 = vst [vmem:[#allocation2 + $0x38] sm:$0xf] %v309_v9  ;;  %v346_v13 = vld [vmem:[#allocation2 + $0x18] sm:$0xff] }
  0xa6   : > { %310 = vst [vmem:[#allocation2 + $0x30] sm:$0xf] %v308_v12  ;;  %v320_v14 = vsel %vm318_vm10, %v637_v6, %v638_v5  ;;  %v354_v15 = vpack.c.bf16 %v346_v13, %v344_v4  ;;  %v345_v16 = vld [vmem:[#allocation2 + $0x10] sm:$0xff] }
  0xa7   : > { %v313_v17 = vpop.permute.xlu1 %312  ;;  %324 = vst [vmem:[#allocation2 + $0x38] sm:$0xf0] %v320_v14  ;;  %v264_v18 = vpop.permute.xlu0 %263  ;;  %v353_v19 = vpack.c.bf16 %v345_v16, %v343_v10 }
  0xa8   : > { %v319_v20 = vsel %vm318_vm10, %v313_v17, %v637_v6  ;;  %v270_v11 = vsel %vm269_vm9, %v264_v18, %v632_v60  ;;  %399 = vmatprep.subr.bf16.mxu0 %v354_v15  ;;  %545 = vmatprep.subr.bf16.mxu1 %v354_v15 }
  0xa9   : > { %323 = vst [vmem:[#allocation2 + $0x30] sm:$0xf0] %v319_v20  ;;  %274 = vst [vmem:[#allocation2 + $0x20] sm:$0xf] %v270_v11  ;;  %400 = vmatpush1.bf16.msra.mxu0 %v353_v19  ;;  %548 = vmatpush1.bf16.msra.mxu1 %v353_v19 }
  0xaa   : > { %v348_v27 = vld [vmem:[#allocation2 + $0x28] sm:$0xff] }
  0xab   : > { %v641_v8 = vpop.permute.xlu0 %640  ;;  %v330_v21 = vpop.permute.xlu1 %329 }
  0xac   : > { %v643_v22 = vunpack.i.h.bf16 %v641_v8  ;;  %v642_v23 = vunpack.i.l.bf16 %v641_v8 }
  0xae   : > { %v332_v24 = vsel %vm331_vm11, %v642_v23, %v643_v22  ;;  %v333_v25 = vsel %vm331_vm11, %v643_v22, %v330_v21  ;;  %v350_v28 = vld [vmem:[#allocation2 + $0x38] sm:$0xff] }
  0xaf   : > { %v336_v30 = vsel %vm826_vm4, %v332_v24, 0.0  ;;  %v337_v31 = vsel %vm822_vm3, %v333_v25, 0.0  ;;  %v356_v32 = vpack.c.bf16 %v350_v28, %v348_v27 }
  0xb0   : > { %338 = vst [vmem:[#allocation2 + $0x40] sm:$0xf] %v336_v30  ;;  %339 = vst [vmem:[#allocation2 + $0x48] sm:$0xf] %v337_v31  ;;  %v347_v33 = vld [vmem:[#allocation2 + $0x20] sm:$0xff]  ;;  %v349_v34 = vld [vmem:[#allocation2 + $0x30] sm:$0xff] }
  0xb1   : > { %401 = vmatprep.subr.bf16.mxu0 %v356_v32  ;;  %546 = vmatprep.subr.bf16.mxu1 %v356_v32  ;;  %v355_v35 = vpack.c.bf16 %v349_v34, %v347_v33 }
  0xb3   : > { %402 = vmatpush1.bf16.msra.mxu0 %v355_v35  ;;  %549 = vmatpush1.bf16.msra.mxu1 %v355_v35 }
  0xb7   : > { %v352_v36 = vld [vmem:[#allocation2 + $0x48] sm:$0xf]  ;;  %v351_v37 = vld [vmem:[#allocation2 + $0x40] sm:$0xf] }
  0xb8   : > { %v358_v38 = vpack.c.bf16 %v352_v36, %v352_v36  ;;  %v357_v29 = vpack.c.bf16 %v351_v37, %v351_v37 }
  0xba   : > { %539 = vmatprep.subr.msk.bf16.mxu0 %vm392_vm12, %v358_v38  ;;  %547 = vmatprep.subr.msk.bf16.mxu1 %vm392_vm12, %v358_v38  ;;  %v394_v26 = vsel %vm392_vm12, %v357_v29, 0 }
  0xbb   : > { %404 = vmatpush1.bf16.msra.mxu0 %v394_v26  ;;  %550 = vmatpush1.bf16.msra.mxu1 %v394_v26 }
  0xbc   : > { %v370_v41 = vpop.permute.xlu1 %369  ;;  %v365_v43 = vpop.permute.xlu0 %364 }
  0xbe   : > { %540 = vmatmul.mubr.msk.bf16.vlgmr.msra.gmra.mrb[0].mxu0 %vm385_vm13, %v646_v39  ;;  %541 = vmatmul.mubr.msk.bf16.vlgmr.msra.gmra.mrb[0].mxu1 %vm385_vm13, %v647_v40 }
  0xc0   : > { %v375_v42 = vpop.permute.xlu1 %374 }
 0x191   : > { %v433_v44 = vpop.f32.mrb[0].mxu0  ;;  %v443_v45 = vpop.f32.mrb[0].mxu1 }
 0x192   : > { %v434_v46 = vadd.f32 %v433_v44, %v365_v43  ;;  %v444_v47 = vadd.f32 %v443_v45, %v375_v42  ;;  %v435_v48 = vpop.f32.mrb[1].mxu0  ;;  %v445_v49 = vpop.f32.mrb[1].mxu1 }
 0x193   : > { %v436_v50 = vadd.f32 %v435_v48, %v365_v43  ;;  %v446_v51 = vadd.f32 %v445_v49, %v375_v42  ;;  %v437_v52 = vpop.f32.mrb[2].mxu0  ;;  %v447_v53 = vpop.f32.mrb[2].mxu1 }
 0x194   : > { %450 = vst [vmem:[%s163_s4] sm:$0xff] %v434_v46  ;;  %454 = vst [vmem:[%s163_s4 + $0x20] sm:$0xff] %v444_v47  ;;  %v438_v54 = vadd.f32 %v437_v52, %v370_v41  ;;  %v439_v55 = vpop.f32.mrb[3].mxu0  ;;  %v448_v56 = vpop.f32.mrb[3].mxu1 }
 0x195   : > { %451 = vst [vmem:[%s163_s4 + $0x8] sm:$0xff] %v436_v50  ;;  %455 = vst [vmem:[%s163_s4 + $0x28] sm:$0xff] %v446_v51  ;;  %v440_v57 = vadd.f32 %v439_v55, %v370_v41 }
 0x196   : > { %452 = vst [vmem:[%s163_s4 + $0x10] sm:$0xff] %v438_v54 }
 0x197   : > { %453 = vst [vmem:[%s163_s4 + $0x18] sm:$0xff] %v440_v57 }
 0x198   : > { %661 = shalt.err (!%p658_p3)
}
 0x199   : > { %s662_s20 = scalar_lea.hbm %s871_s8, 768  ;;  %s666_s26 = scalar_lea.hbm %s917_s3, 1536 }
 0x19a   : > { %p663_p4 = scmp.ne.s32.totalorder %s871_s8, %s662_s20  ;;  %p667_p9 = scmp.lt.u32.totalorder %s871_s8, %s917_s3 }
 0x19b   : > { %p668_p10 = scmp.lt.u32.totalorder %s666_s26, %s662_s20  ;;  %p670_p12 = scmp.lt.u32.totalorder %s662_s20, %s871_s8 }
 0x19c   : > { %p664_p7 = pnand %p663_p4, %p782_p5 }
 0x19d   : > { %p669_p11 = por %p668_p10, %p667_p9 }
 0x19e   : > { %p665_p8 = pneg %p664_p7 }
 0x19f   : > { %p671_p13 = por %p670_p12, %p669_p11 }
 0x1a1   : > { %p672_p0 = pnand %p671_p13, %p665_p8 }
 0x1a3   : > { %675 = shalt.err (!%p672_p0)
}
 0x1a4   : > { %s722_s29 = smov 256   ;;  %s723_s30 = smov 16  }
 0x1a5   : > { %554 = dma.vmem_to_hbm [thread:$0]  (%p782_p5), %s866_s5, 768, %s871_s8, %s873_s9, %s722_s29, %s722_s29, %s723_s30  }
 0x1a6 PF: > { %p560_p1 = scmp.ge.s32.totalorder %s710_s15, 2  ;;  %s485_s4 = sand.u32 1, %s698_s12  }
 0x1a7   : > { %s486_s6 = scalar_lea.sflag [#allocation4], %s485_s4 }
 0x1a8   : > { %p557_p2 = pnand %p560_p1, %p786_p6 }
 0x1aa   : > { %693 = dma.done.wait (!%p557_p2), %s486_s6, 768  }
 0x1ab   : > { %695 = vsyncadd (!%p557_p2), %s486_s6, 4294966528  ;;  %p13_p3 = scmp.ge.s32.totalorder %s769_s18, 4   ;;  %s928_s12 = smov %s702_s13 }
 0x1ac   : > { %s929_s13 = smov %s706_s14  ;;  %s930_s14 = smov %s780_s21 }
 0x1ad   : > { %s931_s15 = smov %s769_s18  ;;  %15 = sbr.rel (!%p13_p3) target bundleno = 3 (0x3), region = 67 }
 0x1b4   :  { %491 = vsyncpa [#allocation4], 1 }
 0x1b5   :  { %493 = vsyncpa [#allocation4 + $0x1], 1 }

</bundles_post_ra>
